<compile_context>
chip_gen: v5e
topology: v5e:2x2
jax: 0.10.0
libtpu: 0.0.40
codegen_flags: <defaults>
</compile_context>

<pallas_src>
import jax
import jax.numpy as jnp
from jax.experimental import pallas as pl
from jax.experimental.pallas import tpu as pltpu

LANE = 128            # TPU lane width
MAX_TK = 2048         # max K (input_dim) tile, multiple of 128
DEFAULT_TB_CAP = 4096  # max batch-tile rows (amortizes ~0.35us per-step overhead)


def _round_up(n, m):
    return ((n + m - 1) // m) * m


def _cdiv(a, b):
    return (a + b - 1) // b


def _tpu_vmem_capacity_bytes():
    """Physical VMEM per TensorCore (v5e/v6e: 128 MiB, v7x: 64 MiB)."""
    try:
        cap = int(pltpu.get_tpu_info().vmem_capacity_bytes)
        if cap > 0:
            return cap
    except Exception:
        pass
    return 64 * 1024 * 1024  # conservative fallback = v7x per-TC VMEM


def _choose_tk(input_dim):
    """K (input_dim) tile: full dim when small, else a 128-multiple divisor."""
    if input_dim <= MAX_TK:
        return input_dim
    t = (MAX_TK // LANE) * LANE
    while t >= LANE:
        if input_dim % t == 0:
            return t
        t -= LANE
    # TODO(synk): no 128-multiple divisor of input_dim <= MAX_TK; fall back to a
    # single K step (bigger x/w1 blocks) rather than zero-padding input_dim.
    return input_dim


def mlp_kernel(x_ref, w1_ref, b1_ref, w2_ref, b2_ref, o_ref, acc_ref):
    """grid = (batch tiles, K tiles).

    x_ref:  [TB, TK]          (any dtype; cast in-kernel)
    w1_ref: [TK, H_pad]       (compute dtype)
    b1_ref: [1, H_pad]        (f32)
    w2_ref: [H_pad, C_pad]    (compute dtype)
    b2_ref: [1, C_pad]        (f32)
    o_ref:  [TB, C_pad]       (out dtype)
    acc_ref:[TB, H_pad]       (f32 scratch, fc1 accumulator across K tiles)
    """
    k = pl.program_id(1)

    @pl.when(k == 0)
    def _():
        acc_ref[...] = jnp.zeros_like(acc_ref)

    # fc1 partial product on the MXU with f32 accumulation.  The cast of x to
    # the weight compute dtype happens here (VPU, hidden under the DMA) so the
    # wrapper never spends an extra HBM pass on x.astype(...).
    x = x_ref[...].astype(w1_ref.dtype)
    acc_ref[...] += jnp.dot(x, w1_ref[...], preferred_element_type=jnp.float32)

    @pl.when(k == pl.num_programs(1) - 1)
    def _():
        h = jnp.maximum(acc_ref[...] + b1_ref[...], 0.0)   # bias + ReLU in f32
        h = h.astype(w2_ref.dtype)
        o = jnp.dot(h, w2_ref[...], preferred_element_type=jnp.float32) + b2_ref[...]
        o_ref[...] = o.astype(o_ref.dtype)


def prepare_params(w1, b1, w2, b2, compute_dtype=jnp.float32):
    """One-time parameter prep (hoist out of the hot path).

    Transposes weights to [in, out] for direct MXU mapping and zero-pads hidden
    and class dims up to 128 lanes so all tiles are lane-dense.  Biases stay
    f32 (added after the f32-accumulated matmuls).
    """
    hidden, input_dim = w1.shape
    num_classes = w2.shape[0]
    h_pad = _round_up(hidden, LANE)
    c_pad = _round_up(num_classes, LANE)

    w1t = jnp.zeros((input_dim, h_pad), compute_dtype)
    w1t = w1t.at[:, :hidden].set(w1.T.astype(compute_dtype))
    b1r = jnp.zeros((1, h_pad), jnp.float32).at[:, :hidden].set(b1.astype(jnp.float32))

    w2t = jnp.zeros((h_pad, c_pad), compute_dtype)
    w2t = w2t.at[:hidden, :num_classes].set(w2.T.astype(compute_dtype))
    b2r = jnp.zeros((1, c_pad), jnp.float32).at[:, :num_classes].set(b2.astype(jnp.float32))

    return w1t, b1r, w2t, b2r, num_classes


def mlp_forward(x, w1t, b1r, w2t, b2r, num_classes, *,
                out_dtype=jnp.float32, tb_cap=DEFAULT_TB_CAP, slice_output=True):
    """x: [B, input_dim] -> logits.

    slice_output=True returns [B, num_classes] (module semantics).  Hot paths
    that consume the logits downstream should pass slice_output=False and
    slice/argmax at the point of use to avoid an extra HBM pass (note: padded
    class columns are exact zeros, mask them before argmax).
    """
    B, input_dim = x.shape
    k_dim, h_pad = w1t.shape
    assert k_dim == input_dim, "x / prepared w1 input_dim mismatch"
    c_pad = w2t.shape[1]

    x_dsize = x.dtype.itemsize
    w_dsize = w1t.dtype.itemsize
    o_dsize = jnp.dtype(out_dtype).itemsize

    # Sublane alignment for the batch axis (8 rows for 4-byte, 16 for 2-byte).
    sub = 8 if min(x_dsize, o_dsize) >= 4 else 16

    # ---- K (input_dim) tiling ------------------------------------------------
    tk = _choose_tk(input_dim)
    nk = _cdiv(input_dim, tk)

    # ---- batch tile from a generation-aware VMEM formula ----------------------
    vmem_cap = _tpu_vmem_capacity_bytes()
    budget = int(vmem_cap * 0.75)                       # headroom for compiler scratch
    w1_bufs = 1 if nk == 1 else 2                       # constant w1 -> single buffer
    fixed = (w1_bufs * tk * h_pad + h_pad * c_pad) * w_dsize + (h_pad + c_pad) * 4
    per_row = 2 * tk * x_dsize + 2 * c_pad * o_dsize + h_pad * 4
    tb = max(sub, min((budget - fixed) // per_row, tb_cap))
    tb = min(tb, _round_up(B, sub))

    # v7x megacore: make sure the 'parallel' batch axis has >= 2 (ideally an
    # even number of) steps so both TensorCores get work.
    nb = _cdiv(B, tb)
    if nb == 1 and B > sub:
        tb = _round_up(_cdiv(B, 2), sub)
    elif nb > 1 and nb % 2 == 1:
        tb_even = _round_up(_cdiv(B, nb + 1), sub)
        if tb_even >= sub:
            tb = tb_even
    tb = max(sub, (tb // sub) * sub)
    nb = _cdiv(B, tb)

    vmem_limit = int(min(vmem_cap, max(fixed + tb * per_row + (4 << 20), 32 << 20)))

    const_mode = pl.Buffered(1)                         # block index never changes
    w1_mode = pl.Buffered(1) if nk == 1 else None       # pipeline w1 only if K-tiled

    out = pl.pallas_call(
        mlp_kernel,
        out_shape=jax.ShapeDtypeStruct((B, c_pad), out_dtype),
        grid_spec=pltpu.PrefetchScalarGridSpec(
            num_scalar_prefetch=0,
            grid=(nb, nk),
            in_specs=[
                # x: tiled along batch (pipelined) and K; last batch block clipped.
                pl.BlockSpec((tb, tk), lambda i, k: (i, k)),
                # w1: K-tiled (double-buffered) or fully VMEM-resident (1 buffer).
                pl.BlockSpec((tk, h_pad), lambda i, k: (k, 0), pipeline_mode=w1_mode),
                # Constant biases / fc2 weights: single-buffered, VMEM-resident.
                pl.BlockSpec((1, h_pad), lambda i, k: (0, 0), pipeline_mode=const_mode),
                pl.BlockSpec((h_pad, c_pad), lambda i, k: (0, 0), pipeline_mode=const_mode),
                pl.BlockSpec((1, c_pad), lambda i, k: (0, 0), pipeline_mode=const_mode),
            ],
            out_specs=pl.BlockSpec((tb, c_pad), lambda i, k: (i, 0)),
            scratch_shapes=[pltpu.VMEM((tb, h_pad), jnp.float32)],
        ),
        compiler_params=pltpu.CompilerParams(
            dimension_semantics=("parallel", "arbitrary"),
            vmem_limit_bytes=vmem_limit,
        ),
    )(x, w1t, b1r, w2t, b2r)

    if slice_output:
        return out[:, :num_classes]
    return out


def reference_forward(x, w1, b1, w2, b2):
    h = jnp.maximum(x @ w1.T + b1, 0.0)
    return h @ w2.T + b2


if __name__ == "__main__":
    # Small deterministic shapes consistent with the module; B chosen so the
    # batch axis splits into two tiles and exercises partial-block clipping.
    B = 72
    input_dim = 32
    hidden = 64
    num_classes = 10

    key = jax.random.PRNGKey(0)
    kx, kw1, kb1, kw2, kb2 = jax.random.split(key, 5)

    x = jax.random.normal(kx, (B, input_dim), dtype=jnp.float32)

    # Deterministic PyTorch-style init: uniform(-1/sqrt(fan_in), 1/sqrt(fan_in)).
    bound1 = 1.0 / jnp.sqrt(input_dim)
    w1 = jax.random.uniform(kw1, (hidden, input_dim), jnp.float32, -bound1, bound1)
    b1 = jax.random.uniform(kb1, (hidden,), jnp.float32, -bound1, bound1)
    bound2 = 1.0 / jnp.sqrt(hidden)
    w2 = jax.random.uniform(kw2, (num_classes, hidden), jnp.float32, -bound2, bound2)
    b2 = jax.random.uniform(kb2, (num_classes,), jnp.float32, -bound2, bound2)

    ref = reference_forward(x, w1, b1, w2, b2)

    # f32 path: matches the PyTorch module numerics.
    params_f32 = prepare_params(w1, b1, w2, b2, jnp.float32)
    out = jax.block_until_ready(mlp_forward(x, *params_f32))
    assert out.shape == (B, num_classes)
    assert jnp.allclose(out, ref, atol=1e-5, rtol=1e-5)

    # bf16 weights + bf16 output: halves the dominant HBM streams (weights are
    # bf16 in HBM, output store is bf16); x stays f32 and is cast in-kernel.
    params_bf16 = prepare_params(w1, b1, w2, b2, jnp.bfloat16)
    out_bf16 = jax.block_until_ready(
        mlp_forward(x, *params_bf16, out_dtype=jnp.bfloat16))
    assert out_bf16.shape == (B, num_classes)
    assert jnp.allclose(out_bf16.astype(jnp.float32), ref, atol=1e-1, rtol=1e-1)

    print("KERNEL_OK")
</pallas_src>

<mosaic_0001>
module attributes {stable_mosaic.version = 11 : i64} {
  func.func @mlp_kernel(%arg0: i32, %arg1: i32, %arg2: memref<40x32xf32, #tpu.memory_space<vmem>>, %arg3: memref<32x128xf32, #tpu.memory_space<vmem>>, %arg4: memref<1x128xf32, #tpu.memory_space<vmem>>, %arg5: memref<128x128xf32, #tpu.memory_space<vmem>>, %arg6: memref<1x128xf32, #tpu.memory_space<vmem>>, %arg7: memref<40x128xf32, #tpu.memory_space<vmem>>, %arg8: memref<40x128xf32, #tpu.memory_space<vmem>>) attributes {dimension_semantics = [#tpu.dimension_semantics<parallel>, #tpu.dimension_semantics<arbitrary>], iteration_bounds = array<i64: 2, 1>, scalar_prefetch = 0 : i64, scratch_operands = 1 : i64, tpu.core_type = #tpu.core_type<tc>, window_params = [{transform_indices = @transform_0, window_bounds = array<i64: 40, 32>}, {pipeline_mode = #tpu.pipeline_mode<synchronous>, transform_indices = @transform_1, window_bounds = array<i64: 32, 128>}, {pipeline_mode = #tpu.pipeline_mode<synchronous>, transform_indices = @transform_2, window_bounds = array<i64: 1, 128>}, {pipeline_mode = #tpu.pipeline_mode<synchronous>, transform_indices = @transform_3, window_bounds = array<i64: 128, 128>}, {pipeline_mode = #tpu.pipeline_mode<synchronous>, transform_indices = @transform_4, window_bounds = array<i64: 1, 128>}, {transform_indices = @transform_5, window_bounds = array<i64: 40, 128>}]} {
    %c0_i32 = arith.constant 0 : i32
    %0 = arith.cmpi eq, %arg1, %c0_i32 : i32
    %1 = arith.extui %0 : i1 to i32
    %c0_i32_0 = arith.constant 0 : i32
    %2 = arith.cmpi ne, %1, %c0_i32_0 : i32
    scf.if %2 {
      %cst_10 = arith.constant 0.000000e+00 : f32
      %12 = vector.broadcast %cst_10 : f32 to vector<40x128xf32>
      %c0_11 = arith.constant 0 : index
      %c0_12 = arith.constant 0 : index
      %13 = vector.load %arg8[%c0_11, %c0_12] : memref<40x128xf32, #tpu.memory_space<vmem>>, vector<40x128xf32>
      tpu.vector_store %arg8[%c0_11, %c0_12], %12 {strides = array<i32>} : memref<40x128xf32, #tpu.memory_space<vmem>>, vector<40x128xf32>,
    } else {
    }
    %c0 = arith.constant 0 : index
    %c0_1 = arith.constant 0 : index
    %3 = vector.load %arg2[%c0, %c0_1] : memref<40x32xf32, #tpu.memory_space<vmem>>, vector<40x32xf32>
    %c0_2 = arith.constant 0 : index
    %c0_3 = arith.constant 0 : index
    %4 = vector.load %arg8[%c0_2, %c0_3] : memref<40x128xf32, #tpu.memory_space<vmem>>, vector<40x128xf32>
    %c0_4 = arith.constant 0 : index
    %c0_5 = arith.constant 0 : index
    %5 = vector.load %arg3[%c0_4, %c0_5] : memref<32x128xf32, #tpu.memory_space<vmem>>, vector<32x128xf32>
    %cst = arith.constant dense<0.000000e+00> : vector<40x128xf32>
    %6 = tpu.matmul %3, %5, %cst {dimension_numbers = #tpu.dot_dimension_numbers<[1], [0], [0], [1], [0, 0, 1, 1], [], []>} : vector<40x32xf32>, vector<32x128xf32>, vector<40x128xf32> -> vector<40x128xf32>
    %7 = arith.addf %4, %6 : vector<40x128xf32>
    %c0_6 = arith.constant 0 : index
    %c0_7 = arith.constant 0 : index
    %8 = vector.load %arg8[%c0_6, %c0_7] : memref<40x128xf32, #tpu.memory_space<vmem>>, vector<40x128xf32>
    tpu.vector_store %arg8[%c0_6, %c0_7], %7 {strides = array<i32>} : memref<40x128xf32, #tpu.memory_space<vmem>>, vector<40x128xf32>,
    %c0_i32_8 = arith.constant 0 : i32
    %9 = arith.cmpi eq, %arg1, %c0_i32_8 : i32
    %10 = arith.extui %9 : i1 to i32
    %c0_i32_9 = arith.constant 0 : i32
    %11 = arith.cmpi ne, %10, %c0_i32_9 : i32
    scf.if %11 {
      %c0_10 = arith.constant 0 : index
      %c0_11 = arith.constant 0 : index
      %12 = vector.load %arg8[%c0_10, %c0_11] : memref<40x128xf32, #tpu.memory_space<vmem>>, vector<40x128xf32>
      %c0_12 = arith.constant 0 : index
      %c0_13 = arith.constant 0 : index
      %13 = vector.load %arg4[%c0_12, %c0_13] : memref<1x128xf32, #tpu.memory_space<vmem>>, vector<1x128xf32>
      %14 = vector.broadcast %13 : vector<1x128xf32> to vector<40x128xf32>
      %15 = arith.addf %12, %14 : vector<40x128xf32>
      %cst_14 = arith.constant 0.000000e+00 : f32
      %16 = vector.broadcast %cst_14 : f32 to vector<40x128xf32>
      %17 = arith.maximumf %15, %16 : vector<40x128xf32>
      %c0_15 = arith.constant 0 : index
      %c0_16 = arith.constant 0 : index
      %18 = vector.load %arg5[%c0_15, %c0_16] : memref<128x128xf32, #tpu.memory_space<vmem>>, vector<128x128xf32>
      %cst_17 = arith.constant dense<0.000000e+00> : vector<40x128xf32>
      %19 = tpu.matmul %17, %18, %cst_17 {dimension_numbers = #tpu.dot_dimension_numbers<[1], [0], [0], [1], [0, 0, 1, 1], [], []>} : vector<40x128xf32>, vector<128x128xf32>, vector<40x128xf32> -> vector<40x128xf32>
      %c0_18 = arith.constant 0 : index
      %c0_19 = arith.constant 0 : index
      %20 = vector.load %arg6[%c0_18, %c0_19] : memref<1x128xf32, #tpu.memory_space<vmem>>, vector<1x128xf32>
      %21 = vector.broadcast %20 : vector<1x128xf32> to vector<40x128xf32>
      %22 = arith.addf %19, %21 : vector<40x128xf32>
      %c0_20 = arith.constant 0 : index
      %c0_21 = arith.constant 0 : index
      %23 = vector.load %arg7[%c0_20, %c0_21] : memref<40x128xf32, #tpu.memory_space<vmem>>, vector<40x128xf32>
      tpu.vector_store %arg7[%c0_20, %c0_21], %22 {strides = array<i32>} : memref<40x128xf32, #tpu.memory_space<vmem>>, vector<40x128xf32>,
    } else {
    }
    return
  }
  func.func @transform_0(%arg0: i32, %arg1: i32) -> (i32, i32) {
    %c0_i32 = arith.constant 0 : i32
    return %arg0, %arg1 : i32, i32
  }
  func.func @transform_1(%arg0: i32, %arg1: i32) -> (i32, i32) {
    %c0_i32 = arith.constant 0 : i32
    %c0_i32_0 = arith.constant 0 : i32
    return %arg1, %c0_i32 : i32, i32
  }
  func.func @transform_2(%arg0: i32, %arg1: i32) -> (i32, i32) {
    %c0_i32 = arith.constant 0 : i32
    %c0_i32_0 = arith.constant 0 : i32
    %c0_i32_1 = arith.constant 0 : i32
    return %c0_i32, %c0_i32_0 : i32, i32
  }
  func.func @transform_3(%arg0: i32, %arg1: i32) -> (i32, i32) {
    %c0_i32 = arith.constant 0 : i32
    %c0_i32_0 = arith.constant 0 : i32
    %c0_i32_1 = arith.constant 0 : i32
    return %c0_i32, %c0_i32_0 : i32, i32
  }
  func.func @transform_4(%arg0: i32, %arg1: i32) -> (i32, i32) {
    %c0_i32 = arith.constant 0 : i32
    %c0_i32_0 = arith.constant 0 : i32
    %c0_i32_1 = arith.constant 0 : i32
    return %c0_i32, %c0_i32_0 : i32, i32
  }
  func.func @transform_5(%arg0: i32, %arg1: i32) -> (i32, i32) {
    %c0_i32 = arith.constant 0 : i32
    %c0_i32_0 = arith.constant 0 : i32
    return %arg0, %c0_i32 : i32, i32
  }
}

</mosaic_0001>

<bundles_post_ra>
// kernel: tpu_custom_call.1
= control target key start
LH: loop header
LB: loop body
LE: loop exit
PB: predicated region body
PF: predicated region fallthrough
CT: control target
= control target key end

     0   :  { %10 = vsyncpa [#allocation4], 0  ;;  %s1048_s0 = inlined_call_operand.vmem [shape: f32[72,32], index: 0, kind: input, shape index: {}]   ;;  %s1049_s1 = inlined_call_operand.vmem [shape: f32[32,128], index: 1, kind: input, shape index: {}]   ;;  %s1050_s2 = inlined_call_operand.vmem [shape: f32[1,128], index: 2, kind: input, shape index: {}]   ;;  %s1051_s3 = inlined_call_operand.hbm [shape: f32[128,128], index: 3, kind: input, shape index: {}]   ;;  %s1052_s4 = inlined_call_operand.vmem [shape: f32[1,128], index: 4, kind: input, shape index: {}]   ;;  %s1053_s5 = inlined_call_operand.hbm [shape: f32[72,128], index: 5, kind: output, shape index: {}]  }
   0x1   :  { %11 = vsyncpa [#allocation5], 0 }
   0x2   :  { %13 = vsyncpa [#allocation5 + $0x1], 0  ;;  %s882_s18 = smov 0   ;;  %s884_s19 = smov 0  }
   0x3   :  { %s886_s20 = smov 0   ;;  %s888_s21 = smov 0  }
   0x4   :  { %s890_s22 = smov 0   ;;  %s892_s23 = smov 0  }
   0x5 LB: > { %s595_s24 = sadd.s32 4294967295, %s844_s23   ;;  %s596_s25 = sadd.s32 4294967294, %s844_s23   ;;  %s844_s23 = sphi %s892_s23, %s19_s23   ;;  %s840_s22 = sphi %s890_s22, %s1061_s22   ;;  %s836_s21 = sphi %s888_s21, %s1060_s21   ;;  %s832_s20 = sphi %s886_s20, %s1059_s20   ;;  %s828_s19 = sphi %s884_s19, %s1058_s19   ;;  %s824_s18 = sphi %s882_s18, %s1057_s18  }
   0x6   : > { %s31_s26 = sadd.s32 1, %s840_s22  ;;  %s155_s27 = sadd.s32 1, %s832_s20 }
   0x7   : > { %p33_p0 = scmp.ge.s32.totalorder %s31_s26, 2  ;;  %p165_p1 = scmp.ne.s32.totalorder %s832_s20, %s828_s19 }
   0x8   : > { %p166_p2 = scmp.eq.s32.totalorder %s595_s24, 1  ;;  %p171_p3 = scmp.ne.s32.totalorder %s828_s19, %s824_s18 }
   0x9   : > { %s1063_s26 = smov (%p33_p0, %s31_s26), 0  ;;  %p172_p5 = scmp.eq.s32.totalorder %s596_s25, 1 }
   0xa   : > { %p922_p4 = por %p166_p2, %p165_p1  ;;  %s152_s29 = ssub.s32 %s840_s22, %s1063_s26 }
   0xb   : > { %p597_p6 = scmp.ge.s32.totalorder %s844_s23, 1  ;;  %p153_p7 = scmp.eq.s32.totalorder %s152_s29, 0 }
   0xc   : > { %p929_p8 = por %p172_p5, %p171_p3  ;;  %p179_p9 = scmp.lt.s32.totalorder %s844_s23, 3 }
   0xd   : > { %s935_s6 = scalar_select %p153_p7, %s832_s20, %s155_s27  }
   0xe   : > { %p180_p10 = pnand %p597_p6, %p179_p9  ;;  %p663_p11 = scmp.eq.s32.totalorder %s595_s24, 0 }
   0xf   : > { %s202_s9 = sshll.u32 %s1051_s3, 4  ;;  %s846_s10 = smov [#allocation3]   ;;  %s203_s9 = int_to_ptr.hbm [resolvable:$true] %s202_s9 }
  0x10   : > { %p655_p12 = pneg %p180_p10  ;;  %s204_s11 = sshll.u32 %s846_s10, 4  ;;  %s205_s11 = int_to_ptr.vmem [resolvable:$true] %s204_s11 }
  0x11   : > { %s847_s12 = smov 128   ;;  %s848_s13 = smov 8  }
  0x12   : > { %p656_p13 = pnand %p663_p11, %p655_p12  ;;  %243 = sbr.rel (%p180_p10) target bundleno = 361 (0x169), region = 40 }
  0x14   : > { %658 = dma.hbm_to_vmem [thread:$0]  (!%p656_p13), %s203_s9, 2048, %s205_s11, [#allocation4], %s847_s12, %s847_s12, %s848_s13  }
  0x17   : > { %815 = dma.done.wait (%p663_p11), [#allocation4], 2048  }
  0x18   : > { %817 = vsyncadd (%p663_p11), [#allocation4], 4294965248  ;;  %s941_s14 = smul.u32 5, %s836_s21  ;;  %v334_v0 = vld [vmem:[%s1049_s1 + $0x18] sm:$0xff]  ;;  %v333_v1 = vld [vmem:[%s1049_s1 + $0x10] sm:$0xff]  ;;  %vm335_vm0 = vcmask 261120  }
  0x19   : > { %363 = vmatpush.msra.mxu0 %v334_v0  ;;  %v332_v2 = vld [vmem:[%s1049_s1 + $0x8] sm:$0xff]  ;;  %v331_v3 = vld [vmem:[%s1049_s1] sm:$0xff]  ;;  %v430_v5 = vld [vmem:[#allocation3 + $0x78] sm:$0xff] }
  0x1a   : > { %p289_p0 = scmp.lt.s32.totalorder %s941_s14, 8  ;;  %v429_v6 = vld [vmem:[#allocation3 + $0x70] sm:$0xff]  ;;  %435 = vmatpush.msra.mxu1 %v430_v5  ;;  %617 = vmatpush.msra.mxu2 %v430_v5  ;;  %v428_v7 = vld [vmem:[#allocation3 + $0x68] sm:$0xff]  ;;  %v427_v8 = vld [vmem:[#allocation3 + $0x60] sm:$0xff]  ;;  %s481_s7 = ssub.s32 (%p922_p4), 9, %s941_s14 }
  0x1b   : > { %364 = vmatpush.msra.mxu0 %v333_v1  ;;  %618 = vmatpush.msra.mxu3 %v430_v5  ;;  %v426_v10 = vld [vmem:[#allocation3 + $0x58] sm:$0xff]  ;;  %v425_v11 = vld [vmem:[#allocation3 + $0x50] sm:$0xff]  ;;  %v424_v12 = vld [vmem:[#allocation3 + $0x48] sm:$0xff]  ;;  %p482_p1 = scmp.lt.s32.totalorder (%p922_p4), %s481_s7, 5 }
  0x1c   : > { %s290_s15 = scalar_select %p289_p0, %s941_s14, 8  ;;  %436 = vmatpush.msra.mxu1 %v429_v6  ;;  %619 = vmatpush.msra.mxu2 %v429_v6  ;;  %v423_v13 = vld [vmem:[#allocation3 + $0x40] sm:$0xff]  ;;  %v422_v15 = vld [vmem:[#allocation3 + $0x38] sm:$0xff]  ;;  %v421_v16 = vld [vmem:[#allocation3 + $0x30] sm:$0xff] }
  0x1d   : > { %365 = vmatpush.msra.mxu0 %v332_v2  ;;  %620 = vmatpush.msra.mxu3 %v429_v6  ;;  %v420_v17 = vld [vmem:[#allocation3 + $0x28] sm:$0xff]  ;;  %v419_v18 = vld [vmem:[#allocation3 + $0x20] sm:$0xff]  ;;  %v418_v20 = vld [vmem:[#allocation3 + $0x18] sm:$0xff] }
  0x1e   : > { %s603_s16 = sshll.u32 %s290_s15, 3  ;;  %437 = vmatpush.msra.mxu1 %v428_v7  ;;  %621 = vmatpush.msra.mxu2 %v428_v7  ;;  %v417_v22 = vld [vmem:[#allocation3 + $0x10] sm:$0xff]  ;;  %v416_v23 = vld [vmem:[#allocation3 + $0x8] sm:$0xff]  ;;  %v415_v24 = vld [vmem:[#allocation3] sm:$0xff] }
  0x1f   : > { %s957_s10 = scalar_lea.vmem %s1048_s0, %s603_s16  ;;  %366 = vmatpush.msra.mxu0 %v331_v3  ;;  %622 = vmatpush.msra.mxu3 %v428_v7  ;;  %v719_v25 = vld [vmem:[%s1050_s2] ss:$0 sm:$0xff]  ;;  %s281_s16 = sand.u32 1, %s828_s19  }
  0x20   : > { %v321_v4 = vld [vmem:[%s957_s10] sm:$0xff]  ;;  %v322_v9 = vld [vmem:[%s957_s10 + $0x8] sm:$0xff]  ;;  %438 = vmatpush.msra.mxu1 %v427_v8  ;;  %623 = vmatpush.msra.mxu2 %v427_v8  ;;  %v323_v14 = vld [vmem:[%s957_s10 + $0x10] sm:$0xff]  ;;  %s649_s17 = smul.u32 40, %s281_s16  ;;  %s983_s29 = scalar_lea.sflag [#allocation5], %s281_s16 }
  0x21   : > { %604 = vmatmul.msk.f32.vlgmr.msra.gmra.mxu0 %vm335_vm0, %v321_v4  ;;  %624 = vmatpush.msra.mxu3 %v427_v8  ;;  %v324_v19 = vld [vmem:[%s957_s10 + $0x18] sm:$0xff]  ;;  %v325_v21 = vld [vmem:[%s957_s10 + $0x20] sm:$0xff] }
  0x22   : > { %439 = vmatpush.msra.mxu1 %v426_v10  ;;  %625 = vmatpush.msra.mxu2 %v426_v10  ;;  %v720_v41 = vld [vmem:[%s1052_s4] ss:$0 sm:$0xff]  ;;  %s283_s27 = scalar_lea.vmem [#allocation6], %s649_s17 }
  0x23   : > { %626 = vmatpush.msra.mxu3 %v426_v10 }
  0x24   : > { %440 = vmatpush.msra.mxu1 %v425_v11  ;;  %627 = vmatpush.msra.mxu2 %v425_v11 }
  0x25   : > { %628 = vmatpush.msra.mxu3 %v425_v11 }
  0x26   : > { %441 = vmatpush.msra.mxu1 %v424_v12  ;;  %629 = vmatpush.msra.mxu2 %v424_v12 }
  0x27   : > { %630 = vmatpush.msra.mxu3 %v424_v12 }
  0x28   : > { %442 = vmatpush.msra.mxu1 %v423_v13  ;;  %631 = vmatpush.msra.mxu2 %v423_v13 }
  0x29   : > { %605 = vmatmul.msk.f32.gmra.mxu0 %vm335_vm0, %v322_v9  ;;  %632 = vmatpush.msra.mxu3 %v423_v13 }
  0x2a   : > { %443 = vmatpush.msra.mxu1 %v422_v15  ;;  %633 = vmatpush.msra.mxu2 %v422_v15 }
  0x2b   : > { %634 = vmatpush.msra.mxu3 %v422_v15 }
  0x2c   : > { %444 = vmatpush.msra.mxu1 %v421_v16  ;;  %635 = vmatpush.msra.mxu2 %v421_v16 }
  0x2d   : > { %636 = vmatpush.msra.mxu3 %v421_v16 }
  0x2e   : > { %445 = vmatpush.msra.mxu1 %v420_v17  ;;  %637 = vmatpush.msra.mxu2 %v420_v17 }
  0x2f   : > { %638 = vmatpush.msra.mxu3 %v420_v17 }
  0x30   : > { %446 = vmatpush.msra.mxu1 %v419_v18  ;;  %639 = vmatpush.msra.mxu2 %v419_v18 }
  0x31   : > { %606 = vmatmul.msk.f32.gmra.mxu0 %vm335_vm0, %v323_v14  ;;  %640 = vmatpush.msra.mxu3 %v419_v18 }
  0x32   : > { %447 = vmatpush.msra.mxu1 %v418_v20  ;;  %641 = vmatpush.msra.mxu2 %v418_v20 }
  0x33   : > { %642 = vmatpush.msra.mxu3 %v418_v20 }
  0x34   : > { %448 = vmatpush.msra.mxu1 %v417_v22  ;;  %643 = vmatpush.msra.mxu2 %v417_v22 }
  0x35   : > { %644 = vmatpush.msra.mxu3 %v417_v22 }
  0x36   : > { %449 = vmatpush.msra.mxu1 %v416_v23  ;;  %645 = vmatpush.msra.mxu2 %v416_v23 }
  0x37   : > { %646 = vmatpush.msra.mxu3 %v416_v23 }
  0x38   : > { %450 = vmatpush.msra.mxu1 %v415_v24  ;;  %647 = vmatpush.msra.mxu2 %v415_v24 }
  0x39   : > { %607 = vmatmul.msk.f32.gmra.mxu0 %vm335_vm0, %v324_v19  ;;  %648 = vmatpush.msra.mxu3 %v415_v24 }
  0x41   : > { %608 = vmatmul.msk.f32.gmra.mxu0 %vm335_vm0, %v325_v21 }
  0x9e   : > { %v368_v26 = vpop.f32.mrf.mxu0 }
  0x9f   : > { %v405_v27 = vadd.f32 %v719_v25, %v368_v26 }
  0xa1   : > { %v410_v28 = vmax.f32 %v405_v27, 0.0 }
  0xa3   : > { %451 = vmatmul.f32.vlgmr.msra.gmra.mxu1 %v410_v28 }
  0xa6   : > { %v371_v29 = vpop.f32.mrf.mxu0 }
  0xa7   : > { %v406_v30 = vadd.f32 %v719_v25, %v371_v29 }
  0xa9   : > { %v411_v31 = vmax.f32 %v406_v30, 0.0 }
  0xab   : > { %454 = vmatmul.f32.vlgmr.msra.gmra.mxu2 %v411_v31 }
  0xae   : > { %v374_v32 = vpop.f32.mrf.mxu0 }
  0xaf   : > { %v407_v33 = vadd.f32 %v719_v25, %v374_v32 }
  0xb1   : > { %v412_v34 = vmax.f32 %v407_v33, 0.0 }
  0xb3   : > { %457 = vmatmul.f32.gmra.mxu2 %v412_v34 }
  0xb6   : > { %v377_v35 = vpop.f32.mrf.mxu0 }
  0xb7   : > { %v408_v36 = vadd.f32 %v719_v25, %v377_v35 }
  0xb9   : > { %v413_v37 = vmax.f32 %v408_v36, 0.0 }
  0xbb   : > { %460 = vmatmul.f32.vlgmr.msra.gmra.mxu3 %v413_v37 }
  0xbe   : > { %v380_v38 = vpop.f32.mrf.mxu0 }
  0xbf   : > { %v409_v39 = vadd.f32 %v719_v25, %v380_v38 }
  0xc1   : > { %v414_v40 = vmax.f32 %v409_v39, 0.0 }
  0xc3   : > { %463 = vmatmul.f32.gmra.mxu3 %v414_v40 }
 0x120   : > { %v452_v42 = vpop.f32.mrf.mxu1 }
 0x121   : > { %v453_v43 = vadd.f32 %v720_v41, %v452_v42 }
 0x123   : > { %467 = vst [vmem:[%s283_s27] sm:$0xff] %v453_v43 }
 0x12e   : > { %v455_v44 = vpop.f32.mrf.mxu2 }
 0x12f   : > { %v456_v45 = vadd.f32 %v720_v41, %v455_v44 }
 0x131   : > { %468 = vst [vmem:[%s283_s27 + $0x8] sm:$0xff] %v456_v45 }
 0x136   : > { %v458_v46 = vpop.f32.mrf.mxu2 }
 0x137   : > { %v459_v47 = vadd.f32 %v720_v41, %v458_v46 }
 0x139   : > { %469 = vst [vmem:[%s283_s27 + $0x10] sm:$0xff] %v459_v47 }
 0x13e   : > { %v461_v48 = vpop.f32.mrf.mxu3 }
 0x13f   : > { %v462_v49 = vadd.f32 %v720_v41, %v461_v48 }
 0x141   : > { %470 = vst [vmem:[%s283_s27 + $0x18] sm:$0xff] %v462_v49 }
 0x145   : > { %479 = sbr.rel (!%p922_p4) target bundleno = 361 (0x169), region = 56 }
 0x146   : > { %v464_v50 = vpop.f32.mrf.mxu3 }
 0x147   : > { %v465_v51 = vadd.f32 %v720_v41, %v464_v50 }
 0x149   : > { %471 = vst [vmem:[%s283_s27 + $0x20] sm:$0xff] %v465_v51 }
 0x14a   : > { %s1065_s7 = smov (!%p482_p1, %s481_s7), 5 }
 0x14b   : > { %s609_s8 = sshll.u32 %s1065_s7, 3 }
 0x14c   : > { %s485_s9 = ssub.s32 40, %s609_s8 }
 0x14d   : > { %s486_s10 = sshll.u32 %s485_s9, 4 }
 0x14e   : > { %487 = vsyncadd %s983_s29, %s486_s10  ;;  %p992_p2 = scmp.ne.s32.totalorder %s609_s8, 0  ;;  %s616_s28 = smul.u32 40, %s836_s21 }
 0x14f   : > { %s492_s12 = sshll.u32 %s283_s27, 4  ;;  %s613_s13 = sshll.u32 %s1065_s7, 7  ;;  %s1001_s12 = int_to_ptr.vmem [resolvable:$true] %s492_s12 }
 0x150   : > { %s490_s16 = scalar_lea.hbm %s1053_s5, %s616_s28  ;;  %s751_s24 = sshra.s32 %s1001_s12, 4  ;;  %s752_s24 = int_to_ptr.vmem [resolvable:$true] %s751_s24 }
 0x151   : > { %s494_s17 = sshll.u32 %s490_s16, 4  ;;  %s753_s25 = sshrl.u32 %s613_s13, 4  ;;  %s1003_s17 = int_to_ptr.hbm [resolvable:$true] %s494_s17 }
 0x152   : > { %s758_s8 = scalar_lea.vmem %s752_s24, %s753_s25  ;;  %s849_s21 = smov [#allocation6]  }
 0x153   : > { %p759_p3 = scmp.ne.s32.totalorder %s752_s24, %s758_s8  ;;  %s762_s27 = scalar_lea.vmem %s849_s21, 80 }
 0x154   : > { %p764_p6 = scmp.lt.s32.totalorder %s762_s27, %s758_s8 }
 0x155   : > { %p760_p4 = pnand %p759_p3, %p992_p2 }
 0x157   : > { %p761_p5 = pneg %p760_p4 }
 0x159   : > { %p766_p7 = pnand %p764_p6, %p761_p5 }
 0x15b   : > { %769 = shalt.err (!%p766_p7)
}
 0x15c   : > { %s770_s9 = sshra.s32 %s1003_s17, 4  ;;  %s781_s15 = scalar_lea.hbm %s1053_s5, 72  ;;  %s771_s9 = int_to_ptr.hbm [resolvable:$true] %s770_s9 }
 0x15d   : > { %s777_s10 = scalar_lea.hbm %s771_s9, %s753_s25  ;;  %p782_p12 = scmp.lt.s32.totalorder %s771_s9, %s1053_s5 }
 0x15e   : > { %p778_p9 = scmp.ne.s32.totalorder %s771_s9, %s777_s10  ;;  %p783_p13 = scmp.lt.s32.totalorder %s781_s15, %s777_s10 }
 0x160   : > { %p779_p10 = pnand %p778_p9, %p992_p2  ;;  %p784_p0 = por %p783_p13, %p782_p12 }
 0x162   : > { %p780_p11 = pneg %p779_p10 }
 0x164   : > { %p785_p1 = pnand %p784_p0, %p780_p11 }
 0x166   : > { %788 = shalt.err (!%p785_p1)
}
 0x167   : > { %s850_s8 = smov 128   ;;  %s851_s25 = smov 8  }
 0x168   : > { %500 = dma.vmem_to_hbm [thread:$0]  (%p992_p2), %s1001_s12, %s613_s13, %s1003_s17, %s983_s29, %s850_s8, %s850_s8, %s851_s25  }
 0x169 PF: > { %p665_p3 = scmp.ge.s32.totalorder %s844_s23, 2  ;;  %s509_s21 = sand.u32 1, %s824_s18  }
 0x16a   : > { %s510_s27 = scalar_lea.sflag [#allocation5], %s509_s21 }
 0x16b   : > { %p660_p4 = pnand %p665_p3, %p929_p8 }
 0x16d   : > { %p661_p5 = pneg %p660_p4 }
 0x16f   : > { %819 = dma.done.wait (%p661_p5), %s510_s27, 640  }
 0x170   : > { %821 = vsyncadd (%p661_p5), %s510_s27, 4294966656  ;;  %s19_s23 = sadd.s32 1, %s844_s23   ;;  %s1057_s18 = smov %s828_s19 }
 0x171   : > { %p16_p6 = scmp.ge.s32.totalorder %s19_s23, 4   ;;  %s1058_s19 = smov %s832_s20 }
 0x172   : > { %s1059_s20 = smov %s935_s6  ;;  %s1060_s21 = smov %s840_s22 }
 0x173   : > { %s1061_s22 = smov %s1063_s26  ;;  %18 = sbr.rel (!%p16_p6) target bundleno = 5 (0x5), region = 91 }
 0x178   :  { %516 = vsyncpa [#allocation4], 1 }
 0x179   :  { %518 = vsyncpa [#allocation4 + $0x1], 1 }
 0x17a   :  { %519 = vsyncpa [#allocation5], 1 }
 0x17b   :  { %521 = vsyncpa [#allocation5 + $0x1], 1 }

</bundles_post_ra>
